<compile_context>
chip_gen: v5e
topology: v5e:2x2
jax: 0.10.0
libtpu: 0.0.40
codegen_flags: <defaults>
</compile_context>

<pallas_src>
import functools

import jax
import jax.numpy as jnp
from jax import lax
from jax.experimental import pallas as pl
from jax.experimental.pallas import tpu as pltpu

EMB_DIM = 300
HIDDEN = 150
HID_PAD = 256      # 150 -> 256: full 128-lane groups / MXU-friendly tiles
OUT_ROWS = 8       # final 150 -> 1 projection padded to 8 output rows

# dot_general dimension numbers for A[M,K] @ B[N,K]^T (same NT pattern as the
# official TPU flash-attention kernel).
_TRANS_B = (((1,), (1,)), ((), ()))


def baseline_kernel(x_ref, emb_ref, w1_ref, b1_ref, w2_ref, b2_ref,
                    w3t_ref, b3_ref, out_ref, *, inv_s):
    # x_ref:   [TB, S]   int32 token ids (batch on sublanes, seq on lanes)
    # emb_ref: [V, 300]  bf16 embedding table (VMEM-resident across steps)
    ids = x_ref[...]                                   # [TB, S]
    tb, seq = ids.shape
    vocab = emb_ref.shape[0]

    # counts[b, v] = #{s : ids[b, s] == v}, accumulated in int32 against a
    # single hoisted [TB, V] iota (no [S, TB, V] f32 one-hot / cast).
    vocab_iota = lax.broadcasted_iota(jnp.int32, (tb, vocab), 1)
    counts = jnp.zeros((tb, vocab), jnp.int32)
    for s in range(seq):                               # static, small seq len
        counts = counts + (ids[:, s:s + 1] == vocab_iota).astype(jnp.int32)

    # Fused embedding lookup + mean-pool:
    #   mean_s emb[x[s, b]] == (counts[b, :] @ emb_table) / S
    # Integer counts <= S are exact in bf16, so the dominant matmul runs at
    # bf16 MXU rate; accumulation stays f32; 1/S is applied once afterwards.
    pooled = jnp.dot(counts.astype(jnp.bfloat16), emb_ref[...],
                     preferred_element_type=jnp.float32) * inv_s  # [TB, 300]

    # fc1 (300 -> 256-padded 150) + ReLU
    h1 = jnp.dot(pooled, w1_ref[...], preferred_element_type=jnp.float32)
    h1 = jnp.maximum(h1 + b1_ref[...], 0.0)            # [TB, 256]

    # fc2 + ReLU (padded rows/cols of w2 are zero -> inert under ReLU)
    h2 = jnp.dot(h1, w2_ref[...], preferred_element_type=jnp.float32)
    h2 = jnp.maximum(h2 + b2_ref[...], 0.0)            # [TB, 256]

    # fc3: lane-major [8, TB] output tile (row 0 is the real logit, rows 1..7
    # are zero-padded) via a transposed-RHS matmul -> dense, tiny writeback.
    out = lax.dot_general(w3t_ref[...], h2, _TRANS_B,
                          preferred_element_type=jnp.float32)     # [8, TB]
    out_ref[...] = out + b3_ref[...]


def prepare_params(emb_table, w1, b1, w2, b2, w3, b3):
    """One-time parameter prep (constant fold, not per-call):
      * embedding table -> bf16 (MXU-native, halves its resident VMEM),
      * hidden dim padded 150 -> 256 with zeros (inert: ReLU(0 + 0) = 0 and
        the padded w2/w3 rows are zero),
      * final projection stored transposed as [8, 256] (row 0 real, rest 0)
        plus an [8, 1] bias column for the lane-major output tile."""
    hid = w1.shape[1]
    emb_bf16 = emb_table.astype(jnp.bfloat16)
    w1p = jnp.pad(w1, ((0, 0), (0, HID_PAD - hid)))
    b1p = jnp.pad(b1, ((0, 0), (0, HID_PAD - hid)))
    w2p = jnp.pad(w2, ((0, HID_PAD - hid), (0, HID_PAD - hid)))
    b2p = jnp.pad(b2, ((0, 0), (0, HID_PAD - hid)))
    w3t = jnp.zeros((OUT_ROWS, HID_PAD), jnp.float32).at[0, :hid].set(w3[:, 0])
    b3c = jnp.zeros((OUT_ROWS, 1), jnp.float32).at[0, 0].set(b3[0, 0])
    return emb_bf16, w1p, b1p, w2p, b2p, w3t, b3c


def baseline_forward(x_idx, emb_bf16, w1p, b1p, w2p, b2p, w3t, b3c,
                     *, batch_tile=128):
    """x_idx: int32 [seq_len, batch] token ids. Returns float32 [batch, 1]."""
    S, B = x_idx.shape
    V, D = emb_bf16.shape
    HP = w1p.shape[1]

    # Batch tiling: 128-wide tiles (B padded up) when B >= batch_tile so the
    # grid has multiple "parallel" steps (2-TC sharding on v7x); raise
    # batch_tile to 256/512 on single-TC v5e/v6e to amortize per-step
    # overhead.  Small batches use a single full-batch block.
    if B >= batch_tile:
        tb = batch_tile
        Bp = -(-B // tb) * tb
    else:
        tb = B
        Bp = B
    nb = Bp // tb

    # Batch-major ids (batch on sublanes, seq on lanes), padded to the tile;
    # padded rows are garbage outputs sliced off below.
    ids_t = x_idx.astype(jnp.int32).T                  # [B, S]
    if Bp != B:
        ids_t = jnp.pad(ids_t, ((0, Bp - B), (0, 0)))

    resident = lambda i: (0, 0)   # table / weights stay resident across steps

    out = pl.pallas_call(
        functools.partial(baseline_kernel, inv_s=1.0 / S),
        out_shape=jax.ShapeDtypeStruct((OUT_ROWS, Bp), jnp.float32),
        grid=(nb,),
        in_specs=[
            pl.BlockSpec((tb, S), lambda i: (i, 0)),        # token-id tile
            pl.BlockSpec((V, D), resident),                 # bf16 emb table
            pl.BlockSpec((D, HP), resident),                # w1 (padded)
            pl.BlockSpec((1, HP), resident),                # b1
            pl.BlockSpec((HP, HP), resident),               # w2
            pl.BlockSpec((1, HP), resident),                # b2
            pl.BlockSpec((OUT_ROWS, HP), resident),         # w3^T (row 0 real)
            pl.BlockSpec((OUT_ROWS, 1), resident),          # b3 column
        ],
        out_specs=pl.BlockSpec((OUT_ROWS, tb), lambda i: (0, i)),
        compiler_params=pltpu.CompilerParams(
            dimension_semantics=("parallel",),
        ),
    )(ids_t, emb_bf16, w1p, b1p, w2p, b2p, w3t, b3c)

    # Row 0 holds the real logit for each batch element.
    return out[0, :B][:, None]                         # [B, 1]


def _ref_forward(x_idx, emb_table_f32, w1, b1, w2, b2, w3, b3):
    emb = jnp.take(emb_table_f32, x_idx, axis=0)       # [S, B, 300]
    pooled = jnp.mean(emb, axis=0)
    h1 = jnp.maximum(pooled @ w1 + b1, 0.0)
    h2 = jnp.maximum(h1 @ w2 + b2, 0.0)
    return h2 @ w3 + b3


if __name__ == "__main__":
    key = jax.random.PRNGKey(0)
    k_emb, k_w1, k_b1, k_w2, k_b2, k_w3, k_b3, k_x = jax.random.split(key, 8)

    VOCAB, SEQ, BATCH = 50, 8, 8

    # Deterministic synthetic parameters (shapes match nn.Linear(300,150)/
    # (150,150)/(150,1); stored as [in, out] so the kernel does x @ W + b).
    emb_table = jax.random.normal(k_emb, (VOCAB, EMB_DIM), jnp.float32) * 0.1
    w1 = jax.random.normal(k_w1, (EMB_DIM, HIDDEN), jnp.float32) * 0.05
    b1 = jax.random.normal(k_b1, (1, HIDDEN), jnp.float32) * 0.05
    w2 = jax.random.normal(k_w2, (HIDDEN, HIDDEN), jnp.float32) * 0.05
    b2 = jax.random.normal(k_b2, (1, HIDDEN), jnp.float32) * 0.05
    w3 = jax.random.normal(k_w3, (HIDDEN, 1), jnp.float32) * 0.05
    b3 = jax.random.normal(k_b3, (1, 1), jnp.float32) * 0.05

    # x: token indices [seq_len, batch]  (PyTorch mean over dim=0 = sequence)
    x_idx = jax.random.randint(k_x, (SEQ, BATCH), 0, VOCAB, jnp.int32)

    params = prepare_params(emb_table, w1, b1, w2, b2, w3, b3)

    fwd = jax.jit(baseline_forward)
    out = jax.block_until_ready(fwd(x_idx, *params))

    # Reference uses the same bf16-quantized embedding table the kernel holds.
    emb_q = emb_table.astype(jnp.bfloat16).astype(jnp.float32)
    ref = _ref_forward(x_idx, emb_q, w1, b1, w2, b2, w3, b3)

    assert out.shape == (BATCH, 1)
    assert jnp.allclose(out, ref, atol=5e-4, rtol=5e-4), float(
        jnp.max(jnp.abs(out - ref)))

    print("KERNEL_OK")
</pallas_src>

<mosaic_0001>
module attributes {stable_mosaic.version = 11 : i64} {
  func.func @baseline_kernel(%arg0: i32, %arg1: memref<8x8xi32, #tpu.memory_space<vmem>>, %arg2: memref<50x300xbf16, #tpu.memory_space<vmem>>, %arg3: memref<300x256xf32, #tpu.memory_space<vmem>>, %arg4: memref<1x256xf32, #tpu.memory_space<vmem>>, %arg5: memref<256x256xf32, #tpu.memory_space<vmem>>, %arg6: memref<1x256xf32, #tpu.memory_space<vmem>>, %arg7: memref<8x256xf32, #tpu.memory_space<vmem>>, %arg8: memref<8x1xf32, #tpu.memory_space<vmem>>, %arg9: memref<8x8xf32, #tpu.memory_space<vmem>>) attributes {dimension_semantics = [#tpu.dimension_semantics<parallel>], iteration_bounds = array<i64: 1>, scalar_prefetch = 0 : i64, scratch_operands = 0 : i64, tpu.core_type = #tpu.core_type<tc>, window_params = [{transform_indices = @transform_0, window_bounds = array<i64: 8, 8>}, {pipeline_mode = #tpu.pipeline_mode<synchronous>, transform_indices = @transform_1, window_bounds = array<i64: 50, 300>}, {pipeline_mode = #tpu.pipeline_mode<synchronous>, transform_indices = @transform_2, window_bounds = array<i64: 300, 256>}, {pipeline_mode = #tpu.pipeline_mode<synchronous>, transform_indices = @transform_3, window_bounds = array<i64: 1, 256>}, {pipeline_mode = #tpu.pipeline_mode<synchronous>, transform_indices = @transform_4, window_bounds = array<i64: 256, 256>}, {pipeline_mode = #tpu.pipeline_mode<synchronous>, transform_indices = @transform_5, window_bounds = array<i64: 1, 256>}, {pipeline_mode = #tpu.pipeline_mode<synchronous>, transform_indices = @transform_6, window_bounds = array<i64: 8, 256>}, {pipeline_mode = #tpu.pipeline_mode<synchronous>, transform_indices = @transform_7, window_bounds = array<i64: 8, 1>}, {transform_indices = @transform_8, window_bounds = array<i64: 8, 8>}]} {
    %c0 = arith.constant 0 : index
    %c0_0 = arith.constant 0 : index
    %0 = vector.load %arg1[%c0, %c0_0] : memref<8x8xi32, #tpu.memory_space<vmem>>, vector<8x8xi32>
    %1 = tpu.iota {dimensions = array<i32: 1>} : vector<8x50xi32>
    %c0_i32 = arith.constant 0 : i32
    %2 = vector.broadcast %c0_i32 : i32 to vector<8x50xi32>
    %3 = vector.extract_strided_slice %0 {offsets = [0, 0], sizes = [8, 1], strides = [1, 1]} : vector<8x8xi32> to vector<8x1xi32>
    %4 = vector.broadcast %3 : vector<8x1xi32> to vector<8x50xi32>
    %5 = arith.cmpi eq, %4, %1 : vector<8x50xi32>
    %6 = arith.extui %5 : vector<8x50xi1> to vector<8x50xi32>
    %7 = arith.addi %2, %6 : vector<8x50xi32>
    %8 = vector.extract_strided_slice %0 {offsets = [0, 1], sizes = [8, 1], strides = [1, 1]} : vector<8x8xi32> to vector<8x1xi32>
    %9 = vector.broadcast %8 : vector<8x1xi32> to vector<8x50xi32>
    %10 = arith.cmpi eq, %9, %1 : vector<8x50xi32>
    %11 = arith.extui %10 : vector<8x50xi1> to vector<8x50xi32>
    %12 = arith.addi %7, %11 : vector<8x50xi32>
    %13 = vector.extract_strided_slice %0 {offsets = [0, 2], sizes = [8, 1], strides = [1, 1]} : vector<8x8xi32> to vector<8x1xi32>
    %14 = vector.broadcast %13 : vector<8x1xi32> to vector<8x50xi32>
    %15 = arith.cmpi eq, %14, %1 : vector<8x50xi32>
    %16 = arith.extui %15 : vector<8x50xi1> to vector<8x50xi32>
    %17 = arith.addi %12, %16 : vector<8x50xi32>
    %18 = vector.extract_strided_slice %0 {offsets = [0, 3], sizes = [8, 1], strides = [1, 1]} : vector<8x8xi32> to vector<8x1xi32>
    %19 = vector.broadcast %18 : vector<8x1xi32> to vector<8x50xi32>
    %20 = arith.cmpi eq, %19, %1 : vector<8x50xi32>
    %21 = arith.extui %20 : vector<8x50xi1> to vector<8x50xi32>
    %22 = arith.addi %17, %21 : vector<8x50xi32>
    %23 = vector.extract_strided_slice %0 {offsets = [0, 4], sizes = [8, 1], strides = [1, 1]} : vector<8x8xi32> to vector<8x1xi32>
    %24 = vector.broadcast %23 : vector<8x1xi32> to vector<8x50xi32>
    %25 = arith.cmpi eq, %24, %1 : vector<8x50xi32>
    %26 = arith.extui %25 : vector<8x50xi1> to vector<8x50xi32>
    %27 = arith.addi %22, %26 : vector<8x50xi32>
    %28 = vector.extract_strided_slice %0 {offsets = [0, 5], sizes = [8, 1], strides = [1, 1]} : vector<8x8xi32> to vector<8x1xi32>
    %29 = vector.broadcast %28 : vector<8x1xi32> to vector<8x50xi32>
    %30 = arith.cmpi eq, %29, %1 : vector<8x50xi32>
    %31 = arith.extui %30 : vector<8x50xi1> to vector<8x50xi32>
    %32 = arith.addi %27, %31 : vector<8x50xi32>
    %33 = vector.extract_strided_slice %0 {offsets = [0, 6], sizes = [8, 1], strides = [1, 1]} : vector<8x8xi32> to vector<8x1xi32>
    %34 = vector.broadcast %33 : vector<8x1xi32> to vector<8x50xi32>
    %35 = arith.cmpi eq, %34, %1 : vector<8x50xi32>
    %36 = arith.extui %35 : vector<8x50xi1> to vector<8x50xi32>
    %37 = arith.addi %32, %36 : vector<8x50xi32>
    %38 = vector.extract_strided_slice %0 {offsets = [0, 7], sizes = [8, 1], strides = [1, 1]} : vector<8x8xi32> to vector<8x1xi32>
    %39 = vector.broadcast %38 : vector<8x1xi32> to vector<8x50xi32>
    %40 = arith.cmpi eq, %39, %1 : vector<8x50xi32>
    %41 = arith.extui %40 : vector<8x50xi1> to vector<8x50xi32>
    %42 = arith.addi %37, %41 : vector<8x50xi32>
    %43 = arith.sitofp %42 : vector<8x50xi32> to vector<8x50xbf16>
    %c0_1 = arith.constant 0 : index
    %c0_2 = arith.constant 0 : index
    %44 = vector.load %arg2[%c0_1, %c0_2] : memref<50x300xbf16, #tpu.memory_space<vmem>>, vector<50x300xbf16>
    %cst = arith.constant dense<0.000000e+00> : vector<8x300xf32>
    %45 = tpu.matmul %43, %44, %cst {dimension_numbers = #tpu.dot_dimension_numbers<[1], [0], [0], [1], [0, 0, 1, 1], [], []>} : vector<8x50xbf16>, vector<50x300xbf16>, vector<8x300xf32> -> vector<8x300xf32>
    %cst_3 = arith.constant 1.250000e-01 : f32
    %46 = vector.broadcast %cst_3 : f32 to vector<8x300xf32>
    %47 = arith.mulf %45, %46 : vector<8x300xf32>
    %c0_4 = arith.constant 0 : index
    %c0_5 = arith.constant 0 : index
    %48 = vector.load %arg3[%c0_4, %c0_5] : memref<300x256xf32, #tpu.memory_space<vmem>>, vector<300x256xf32>
    %cst_6 = arith.constant dense<0.000000e+00> : vector<8x256xf32>
    %49 = tpu.matmul %47, %48, %cst_6 {dimension_numbers = #tpu.dot_dimension_numbers<[1], [0], [0], [1], [0, 0, 1, 1], [], []>} : vector<8x300xf32>, vector<300x256xf32>, vector<8x256xf32> -> vector<8x256xf32>
    %c0_7 = arith.constant 0 : index
    %c0_8 = arith.constant 0 : index
    %50 = vector.load %arg4[%c0_7, %c0_8] : memref<1x256xf32, #tpu.memory_space<vmem>>, vector<1x256xf32>
    %51 = vector.broadcast %50 : vector<1x256xf32> to vector<8x256xf32>
    %52 = arith.addf %49, %51 : vector<8x256xf32>
    %cst_9 = arith.constant 0.000000e+00 : f32
    %53 = vector.broadcast %cst_9 : f32 to vector<8x256xf32>
    %54 = arith.maximumf %52, %53 : vector<8x256xf32>
    %c0_10 = arith.constant 0 : index
    %c0_11 = arith.constant 0 : index
    %55 = vector.load %arg5[%c0_10, %c0_11] : memref<256x256xf32, #tpu.memory_space<vmem>>, vector<256x256xf32>
    %cst_12 = arith.constant dense<0.000000e+00> : vector<8x256xf32>
    %56 = tpu.matmul %54, %55, %cst_12 {dimension_numbers = #tpu.dot_dimension_numbers<[1], [0], [0], [1], [0, 0, 1, 1], [], []>} : vector<8x256xf32>, vector<256x256xf32>, vector<8x256xf32> -> vector<8x256xf32>
    %c0_13 = arith.constant 0 : index
    %c0_14 = arith.constant 0 : index
    %57 = vector.load %arg6[%c0_13, %c0_14] : memref<1x256xf32, #tpu.memory_space<vmem>>, vector<1x256xf32>
    %58 = vector.broadcast %57 : vector<1x256xf32> to vector<8x256xf32>
    %59 = arith.addf %56, %58 : vector<8x256xf32>
    %cst_15 = arith.constant 0.000000e+00 : f32
    %60 = vector.broadcast %cst_15 : f32 to vector<8x256xf32>
    %61 = arith.maximumf %59, %60 : vector<8x256xf32>
    %c0_16 = arith.constant 0 : index
    %c0_17 = arith.constant 0 : index
    %62 = vector.load %arg7[%c0_16, %c0_17] : memref<8x256xf32, #tpu.memory_space<vmem>>, vector<8x256xf32>
    %cst_18 = arith.constant dense<0.000000e+00> : vector<8x8xf32>
    %63 = tpu.matmul %62, %61, %cst_18 {dimension_numbers = #tpu.dot_dimension_numbers<[1], [1], [0], [0], [0, 0, 1, 0], [], []>} : vector<8x256xf32>, vector<8x256xf32>, vector<8x8xf32> -> vector<8x8xf32>
    %c0_19 = arith.constant 0 : index
    %c0_20 = arith.constant 0 : index
    %64 = vector.load %arg8[%c0_19, %c0_20] : memref<8x1xf32, #tpu.memory_space<vmem>>, vector<8x1xf32>
    %65 = vector.broadcast %64 : vector<8x1xf32> to vector<8x8xf32>
    %66 = arith.addf %63, %65 : vector<8x8xf32>
    %c0_21 = arith.constant 0 : index
    %c0_22 = arith.constant 0 : index
    %67 = vector.load %arg9[%c0_21, %c0_22] : memref<8x8xf32, #tpu.memory_space<vmem>>, vector<8x8xf32>
    tpu.vector_store %arg9[%c0_21, %c0_22], %66 {strides = array<i32>} : memref<8x8xf32, #tpu.memory_space<vmem>>, vector<8x8xf32>,
    return
  }
  func.func @transform_0(%arg0: i32) -> (i32, i32) {
    %c0_i32 = arith.constant 0 : i32
    %c0_i32_0 = arith.constant 0 : i32
    return %arg0, %c0_i32 : i32, i32
  }
  func.func @transform_1(%arg0: i32) -> (i32, i32) {
    %c0_i32 = arith.constant 0 : i32
    %c0_i32_0 = arith.constant 0 : i32
    %c0_i32_1 = arith.constant 0 : i32
    return %c0_i32, %c0_i32_0 : i32, i32
  }
  func.func @transform_2(%arg0: i32) -> (i32, i32) {
    %c0_i32 = arith.constant 0 : i32
    %c0_i32_0 = arith.constant 0 : i32
    %c0_i32_1 = arith.constant 0 : i32
    return %c0_i32, %c0_i32_0 : i32, i32
  }
  func.func @transform_3(%arg0: i32) -> (i32, i32) {
    %c0_i32 = arith.constant 0 : i32
    %c0_i32_0 = arith.constant 0 : i32
    %c0_i32_1 = arith.constant 0 : i32
    return %c0_i32, %c0_i32_0 : i32, i32
  }
  func.func @transform_4(%arg0: i32) -> (i32, i32) {
    %c0_i32 = arith.constant 0 : i32
    %c0_i32_0 = arith.constant 0 : i32
    %c0_i32_1 = arith.constant 0 : i32
    return %c0_i32, %c0_i32_0 : i32, i32
  }
  func.func @transform_5(%arg0: i32) -> (i32, i32) {
    %c0_i32 = arith.constant 0 : i32
    %c0_i32_0 = arith.constant 0 : i32
    %c0_i32_1 = arith.constant 0 : i32
    return %c0_i32, %c0_i32_0 : i32, i32
  }
  func.func @transform_6(%arg0: i32) -> (i32, i32) {
    %c0_i32 = arith.constant 0 : i32
    %c0_i32_0 = arith.constant 0 : i32
    %c0_i32_1 = arith.constant 0 : i32
    return %c0_i32, %c0_i32_0 : i32, i32
  }
  func.func @transform_7(%arg0: i32) -> (i32, i32) {
    %c0_i32 = arith.constant 0 : i32
    %c0_i32_0 = arith.constant 0 : i32
    %c0_i32_1 = arith.constant 0 : i32
    return %c0_i32, %c0_i32_0 : i32, i32
  }
  func.func @transform_8(%arg0: i32) -> (i32, i32) {
    %c0_i32 = arith.constant 0 : i32
    %c0_i32_0 = arith.constant 0 : i32
    return %c0_i32, %arg0 : i32, i32
  }
}

</mosaic_0001>

<bundles_post_ra>
// kernel: baseline_forward.1
= control target key start
LH: loop header
LB: loop body
LE: loop exit
PB: predicated region body
PF: predicated region fallthrough
CT: control target
= control target key end

     0   :  { %13 = vsyncpa [#allocation3], 0  ;;  %s956_s0 = inlined_call_operand.vmem [shape: s32[8,8], index: 0, kind: input, shape index: {}]   ;;  %s957_s1 = inlined_call_operand.hbm [shape: bf16[50,300], index: 1, kind: input, shape index: {}]   ;;  %s958_s2 = inlined_call_operand.hbm [shape: f32[300,256], index: 2, kind: input, shape index: {}]   ;;  %s959_s3 = inlined_call_operand.vmem [shape: f32[1,256], index: 3, kind: input, shape index: {}]   ;;  %s960_s4 = inlined_call_operand.hbm [shape: f32[256,256], index: 4, kind: input, shape index: {}]   ;;  %s961_s5 = inlined_call_operand.vmem [shape: f32[1,256], index: 5, kind: input, shape index: {}]   ;;  %s962_s6 = inlined_call_operand.vmem [shape: f32[8,256], index: 6, kind: input, shape index: {}]   ;;  %s963_s7 = inlined_call_operand.vmem [shape: f32[8,1], index: 7, kind: input, shape index: {}]   ;;  %s964_s8 = inlined_call_operand.vmem [shape: f32[8,8], index: 8, kind: output, shape index: {}]  }
   0x1   :  { %14 = vsyncpa [#allocation5], 0  ;;  %s34_s29 = sshll.u32 %s958_s2, 4  ;;  %s830_s30 = smov [#allocation4]   ;;  %s35_s29 = int_to_ptr.hbm [resolvable:$true] %s34_s29 }
   0x2   :  { %s36_s9 = sshll.u32 %s830_s30, 4  ;;  %s21_s12 = sshll.u32 %s957_s1, 4  ;;  %s37_s9 = int_to_ptr.vmem [resolvable:$true] %s36_s9  ;;  %s22_s12 = int_to_ptr.hbm [resolvable:$true] %s21_s12 }
   0x3   :  { %s831_s13 = smov 256   ;;  %s832_s14 = smov 16  }
   0x4   :  { %42 = dma.hbm_to_vmem [thread:$0]  %s35_s29, 9728, %s37_s9, [#allocation5], %s831_s13, %s831_s13, %s832_s14  }
   0x5   :  { %s833_s15 = smov [#allocation2]   ;;  %s834_s17 = smov 192  }
   0x6   :  { %s23_s16 = sshll.u32 %s833_s15, 4  ;;  %s835_s18 = smov 12   ;;  %s24_s16 = int_to_ptr.vmem [resolvable:$true] %s23_s16 }
   0x7   :  { %29 = dma.hbm_to_vmem [thread:$0]  %s22_s12, 1344, %s24_s16, [#allocation3], %s834_s17, %s834_s17, %s835_s18  }
   0x8   :  { %s49_s20 = sshll.u32 %s960_s4, 4  ;;  %s836_s21 = smov [#allocation6]   ;;  %s50_s20 = int_to_ptr.hbm [resolvable:$true] %s49_s20 }
   0x9   :  { %s51_s22 = sshll.u32 %s836_s21, 4  ;;  %s52_s22 = int_to_ptr.vmem [resolvable:$true] %s51_s22 }
   0xa   :  { %57 = dma.hbm_to_vmem [thread:$0]  %s50_s20, 8192, %s52_s22, [#allocation5], %s831_s13, %s831_s13, %s832_s14  }
   0xb   :  { %826 = dma.done.wait [#allocation3], 1344  }
   0xc   :  { %827 = vsyncadd [#allocation3], 4294965952 }
   0xd   :  { %828 = dma.done.wait [#allocation5], 17920  }
   0xe   :  { %829 = vsyncadd [#allocation5], 4294949376  ;;  %v837_v0 = vmov 0   ;;  %v838_v1 = vmov 2   ;;  %v839_v2 = vmov 4   ;;  %v77_v3 = vld [vmem:[%s956_s0] sm:$0xff]  ;;  %v78_v51 = vlaneseq }
   0xf   :  { %745 = vset.pattern.permute.xlu0 %v837_v0  ;;  %747 = vset.pattern.permute.xlu1 %v838_v1  ;;  %v840_v4 = vmov 1   ;;  %v841_v5 = vmov 3   ;;  %v842_v6 = vmov 5   ;;  %v843_v7 = vmov 6   ;;  %v141_v9 = vld [vmem:[#allocation2 + $0x48] sm:$0x11] }
  0x10   :  { %749 = vset.pattern.permute.xlu2 %v839_v2  ;;  %81 = vperm.xlu0 %745, %v77_v3   ;;  %v844_v8 = vmov 7   ;;  %v142_v10 = vld [vmem:[#allocation2 + $0x50] sm:$0x1]  ;;  %v175_v11 = vunpack.c.l.b16 %v141_v9  ;;  %v176_v12 = vunpack.c.h.b16 %v141_v9  ;;  %vm203_vm0 = vcmask 1040384   ;;  %v728_v21 = vld [vmem:[#allocation2 + $0x38] sm:$0xf0] }
  0x11   :  { %92 = vperm.xlu1 %747, %v77_v3   ;;  %104 = vperm.xlu2 %749, %v77_v3   ;;  %v177_v13 = vunpack.c.l.b16 %v142_v10  ;;  %v704_v20 = vld [vmem:[#allocation2 + $0x30] sm:$0xf]  ;;  %v727_v22 = vld [vmem:[#allocation2 + $0x34] sm:$0xf]  ;;  %v706_v24 = vld [vmem:[#allocation2 + $0x3c] sm:$0xf0] }
  0x12   :  { %v187_v14 = vpack.c.b16 %v175_v11, %v175_v11  ;;  %v188_v15 = vpack.c.b16 %v176_v12, %v176_v12  ;;  %v705_v23 = vor.u32 %v728_v21, %v704_v20  ;;  %v712_v25 = vld [vmem:[#allocation2 + $0x38] sm:$0xf]  ;;  %v729_v26 = vld [vmem:[#allocation2 + $0x40] sm:$0xf0]  ;;  %v709_v27 = vor.u32 %v727_v22, %v706_v24  ;;  %v724_v31 = vld [vmem:[#allocation2 + $0x1c] sm:$0xf] }
  0x13   :  { %v189_v16 = vpack.c.b16 %v177_v13, %v177_v13  ;;  %v713_v28 = vor.u32 %v729_v26, %v712_v25  ;;  %v692_v29 = vld [vmem:[#allocation2 + $0x18] sm:$0xf]  ;;  %v725_v30 = vld [vmem:[#allocation2 + $0x20] sm:$0xf0]  ;;  %v694_v33 = vld [vmem:[#allocation2 + $0x24] sm:$0xf0] }
  0x14   :  { %v205_v17 = vsel %vm203_vm0, %v187_v14, 0  ;;  %v208_v18 = vsel %vm203_vm0, %v188_v15, 0  ;;  %v693_v32 = vor.u32 %v725_v30, %v692_v29  ;;  %v700_v34 = vld [vmem:[#allocation2 + $0x20] sm:$0xf]  ;;  %v697_v35 = vor.u32 %v724_v31, %v694_v33  ;;  %v726_v36 = vld [vmem:[#allocation2 + $0x28] sm:$0xf0] }
  0x15   :  { %v211_v19 = vsel %vm203_vm0, %v189_v16, 0  ;;  %217 = vmatpush.bf16.msra.mxu0 %v205_v17  ;;  %230 = vmatpush.bf16.msra.mxu1 %v208_v18  ;;  %v701_v37 = vor.u32 %v726_v36, %v700_v34  ;;  %v680_v38 = vld [vmem:[#allocation2] sm:$0xf]  ;;  %v722_v39 = vld [vmem:[#allocation2 + $0x8] sm:$0xf0]  ;;  %v285_v48 = vld [vmem:[#allocation4 + $0xf0] sm:$0xff] }
  0x16   :  { %243 = vmatpush.bf16.msra.mxu2 %v211_v19  ;;  %v721_v40 = vld [vmem:[#allocation2 + $0x4] sm:$0xf]  ;;  %v681_v41 = vor.u32 %v722_v39, %v680_v38  ;;  %v682_v42 = vld [vmem:[#allocation2 + $0xc] sm:$0xf0]  ;;  %v688_v43 = vld [vmem:[#allocation2 + $0x8] sm:$0xf]  ;;  %348 = vmatpush.msra.mxu3 %v285_v48 }
  0x17   :  { %v723_v44 = vld [vmem:[#allocation2 + $0x10] sm:$0xf0]  ;;  %v685_v45 = vor.u32 %v721_v40, %v682_v42  ;;  %v317_v50 = vld [vmem:[#allocation4 + $0x1f0] sm:$0xff]  ;;  %v286_v54 = vld [vmem:[#allocation4 + $0xf8] sm:$0xff]  ;;  %vm341_vm1 = vcmask 1043456   ;;  %v909_v1 = vand.u32 127, %v78_v51 }
  0x18   :  { %746 = vset.pattern.permute.xlu0 %v840_v4  ;;  %v689_v46 = vor.u32 %v723_v44, %v688_v43  ;;  %v283_v49 = vld [vmem:[#allocation4 + $0xe0] sm:$0xff]  ;;  %v281_v56 = vld [vmem:[#allocation4 + $0xd0] sm:$0xff]  ;;  %v284_v57 = vld [vmem:[#allocation4 + $0xe8] sm:$0xff]  ;;  %vm199_vm10 = vcmask 408576   ;;  %vm337_vm11 = vcmask 359424   ;;  %vm670_vm12 = vcmask 64512  }
  0x19   :  { %748 = vset.pattern.permute.xlu1 %v841_v5  ;;  %86 = vperm.xlu0 %746, %v77_v3   ;;  %v315_v55 = vld [vmem:[#allocation4 + $0x1e0] sm:$0xff]  ;;  %v329_v58 = vld [vmem:[#allocation4 + $0x250] sm:$0xf]  ;;  %v282_v60 = vld [vmem:[#allocation4 + $0xd8] sm:$0xff] }
  0x1a   :  { %98 = vperm.xlu1 %748, %v77_v3   ;;  %750 = vset.pattern.permute.xlu2 %v842_v6  ;;  %v313_v59 = vld [vmem:[#allocation4 + $0x1d0] sm:$0xff]  ;;  %v279_v61 = vld [vmem:[#allocation4 + $0xc0] sm:$0xff]  ;;  %v280_v2 = vld [vmem:[#allocation4 + $0xc8] sm:$0xff] }
  0x1b   :  { %110 = vperm.xlu2 %750, %v77_v3   ;;  %218 = vmatpush.bf16.msra.mxu0 %v705_v23  ;;  %v327_v62 = vld [vmem:[#allocation4 + $0x240] sm:$0xff]  ;;  %v277_v5 = vld [vmem:[#allocation4 + $0xb0] sm:$0xff]  ;;  %v276_v11 = vld [vmem:[#allocation4 + $0xa8] sm:$0xff] }
  0x1c   :  { %231 = vmatpush.bf16.msra.mxu1 %v709_v27  ;;  %244 = vmatpush.bf16.msra.mxu2 %v713_v28  ;;  %v311_v63 = vld [vmem:[#allocation4 + $0x1c0] sm:$0xff]  ;;  %v309_v6 = vld [vmem:[#allocation4 + $0x1b0] sm:$0xff]  ;;  %v274_v17 = vld [vmem:[#allocation4 + $0x98] sm:$0xff] }
  0x1d   :  { %349 = vmatpush.msra.mxu3 %v283_v49  ;;  %v275_v9 = vld [vmem:[#allocation4 + $0xa0] sm:$0xff]  ;;  %v321_v12 = vld [vmem:[#allocation4 + $0x210] sm:$0xff]  ;;  %v272_v24 = vld [vmem:[#allocation4 + $0x88] sm:$0xff] }
  0x1e   :  { %v307_v10 = vld [vmem:[#allocation4 + $0x1a0] sm:$0xff]  ;;  %v273_v15 = vld [vmem:[#allocation4 + $0x90] sm:$0xff]  ;;  %v270_v29 = vld [vmem:[#allocation4 + $0x78] sm:$0xff] }
  0x1f   :  { %219 = vmatpush.bf16.msra.mxu0 %v693_v32  ;;  %350 = vmatpush.msra.mxu3 %v281_v56  ;;  %v305_v16 = vld [vmem:[#allocation4 + $0x190] sm:$0xff]  ;;  %v319_v18 = vld [vmem:[#allocation4 + $0x200] sm:$0xff]  ;;  %v260_v56 = vld [vmem:[#allocation4 + $0x28] sm:$0xff] }
  0x20   :  { %232 = vmatpush.bf16.msra.mxu1 %v697_v35  ;;  %245 = vmatpush.bf16.msra.mxu2 %v701_v37  ;;  %v271_v21 = vld [vmem:[#allocation4 + $0x80] sm:$0xff]  ;;  %v269_v26 = vld [vmem:[#allocation4 + $0x70] sm:$0xff]  ;;  %v268_v35 = vld [vmem:[#allocation4 + $0x68] sm:$0xff] }
  0x21   :  { %753 = vset.pattern.permute.xlu0 %v837_v0  ;;  %351 = vmatpush.msra.mxu3 %v279_v61  ;;  %v303_v22 = vld [vmem:[#allocation4 + $0x180] sm:$0xff]  ;;  %v301_v27 = vld [vmem:[#allocation4 + $0x170] sm:$0xff]  ;;  %v316_v61 = vld [vmem:[#allocation4 + $0x1e8] sm:$0xff] }
  0x22   :  { %751 = vset.pattern.permute.xlu1 %v843_v7  ;;  %v278_v7 = vld [vmem:[#allocation4 + $0xb8] sm:$0xff]  ;;  %v267_v32 = vld [vmem:[#allocation4 + $0x60] sm:$0xff]  ;;  %v265_v37 = vld [vmem:[#allocation4 + $0x50] sm:$0xff] }
  0x23   :  { %116 = vperm.xlu1 %751, %v77_v3   ;;  %752 = vset.pattern.permute.xlu2 %v844_v8  ;;  %v323_v8 = vld [vmem:[#allocation4 + $0x220] sm:$0xff]  ;;  %v297_v38 = vld [vmem:[#allocation4 + $0x150] sm:$0xff] }
  0x24   :  { %122 = vperm.xlu2 %752, %v77_v3   ;;  %220 = vmatpush.bf16.msra.mxu0 %v681_v41  ;;  %v325_v3 = vld [vmem:[#allocation4 + $0x230] sm:$0xff]  ;;  %v299_v33 = vld [vmem:[#allocation4 + $0x160] sm:$0xff]  ;;  %v266_v41 = vld [vmem:[#allocation4 + $0x58] sm:$0xff] }
  0x25   :  { %233 = vmatpush.bf16.msra.mxu1 %v685_v45  ;;  %246 = vmatpush.bf16.msra.mxu2 %v689_v46  ;;  %v263_v43 = vld [vmem:[#allocation4 + $0x40] sm:$0xff]  ;;  %v261_v49 = vld [vmem:[#allocation4 + $0x30] sm:$0xff] }
  0x26   :  { %352 = vmatpush.msra.mxu3 %v277_v5  ;;  %v295_v44 = vld [vmem:[#allocation4 + $0x140] sm:$0xff]  ;;  %v258_v5 = vld [vmem:[#allocation4 + $0x18] sm:$0xff] }
  0x28   :  { %368 = vmatpush.msrb.mxu0 %v317_v50  ;;  %353 = vmatpush.msra.mxu3 %v275_v9  ;;  %v293_v50 = vld [vmem:[#allocation4 + $0x130] sm:$0xff]  ;;  %v256_v9 = vld [vmem:[#allocation4 + $0x8] sm:$0xff] }
  0x29   :  { %408 = vmatpush.msrb.mxu2 %v286_v54  ;;  %717 = vmatpush.msk.msrb.mxu1 %vm341_vm1, %v329_v58  ;;  %v291_v54 = vld [vmem:[#allocation4 + $0x120] sm:$0xff] }
  0x2a   :  { %369 = vmatpush.msrb.mxu0 %v315_v55  ;;  %354 = vmatpush.msra.mxu3 %v273_v15  ;;  %v324_v15 = vld [vmem:[#allocation4 + $0x228] sm:$0xff] }
  0x2b   :  { %409 = vmatpush.msrb.mxu2 %v284_v57  ;;  %399 = vmatpush.msrb.mxu1 %v327_v62  ;;  %v257_v57 = vld [vmem:[#allocation4 + $0x10] sm:$0xff]  ;;  %v314_v62 = vld [vmem:[#allocation4 + $0x1d8] sm:$0xff] }
  0x2c   :  { %370 = vmatpush.msrb.mxu0 %v313_v59  ;;  %355 = vmatpush.msra.mxu3 %v271_v21  ;;  %v318_v59 = vld [vmem:[#allocation4 + $0x1f8] sm:$0xff] }
  0x2d   :  { %410 = vmatpush.msrb.mxu2 %v282_v60  ;;  %400 = vmatpush.msrb.mxu1 %v325_v3  ;;  %v255_v60 = vld [vmem:[#allocation4] sm:$0xff]  ;;  %v306_v3 = vld [vmem:[#allocation4 + $0x198] sm:$0xff] }
  0x2e   :  { %371 = vmatpush.msrb.mxu0 %v311_v63  ;;  %356 = vmatpush.msra.mxu3 %v269_v26  ;;  %v312_v63 = vld [vmem:[#allocation4 + $0x1c8] sm:$0xff]  ;;  %v290_v21 = vld [vmem:[#allocation4 + $0x118] sm:$0xff]  ;;  %v532_v26 = vld [vmem:[#allocation6 + $0x1f0] sm:$0xff] }
  0x2f   :  { %411 = vmatpush.msrb.mxu2 %v280_v2  ;;  %401 = vmatpush.msrb.mxu1 %v323_v8  ;;  %v308_v2 = vld [vmem:[#allocation4 + $0x1a8] sm:$0xff]  ;;  %v287_v8 = vld [vmem:[#allocation4 + $0x100] sm:$0xff] }
  0x30   :  { %372 = vmatpush.msrb.mxu0 %v309_v6  ;;  %357 = vmatpush.msra.mxu3 %v267_v32  ;;  %v304_v6 = vld [vmem:[#allocation4 + $0x188] sm:$0xff] }
  0x31   :  { %412 = vmatpush.msrb.mxu2 %v278_v7  ;;  %402 = vmatpush.msrb.mxu1 %v321_v12  ;;  %v330_v7 = vld [vmem:[#allocation4 + $0x258] sm:$0xf]  ;;  %v300_v12 = vld [vmem:[#allocation4 + $0x168] sm:$0xff] }
  0x32   :  { %373 = vmatpush.msrb.mxu0 %v307_v10  ;;  %358 = vmatpush.msra.mxu3 %v265_v37  ;;  %v302_v10 = vld [vmem:[#allocation4 + $0x178] sm:$0xff]  ;;  %v491_v32 = vld [vmem:[#allocation6 + $0xa8] sm:$0xff] }
  0x33   :  { %413 = vmatpush.msrb.mxu2 %v276_v11  ;;  %403 = vmatpush.msrb.mxu1 %v319_v18  ;;  %v328_v11 = vld [vmem:[#allocation4 + $0x248] sm:$0xff]  ;;  %v294_v18 = vld [vmem:[#allocation4 + $0x138] sm:$0xff] }
  0x34   :  { %374 = vmatpush.msrb.mxu0 %v305_v16  ;;  %359 = vmatpush.msra.mxu3 %v263_v43  ;;  %v296_v16 = vld [vmem:[#allocation4 + $0x148] sm:$0xff] }
  0x35   :  { %414 = vmatpush.msrb.mxu2 %v274_v17  ;;  %v322_v17 = vld [vmem:[#allocation4 + $0x218] sm:$0xff] }
  0x36   :  { %375 = vmatpush.msrb.mxu0 %v303_v22  ;;  %360 = vmatpush.msra.mxu3 %v261_v49  ;;  %v288_v22 = vld [vmem:[#allocation4 + $0x108] sm:$0xff]  ;;  %v492_v49 = vld [vmem:[#allocation6 + $0xb0] sm:$0xff] }
  0x37   :  { %415 = vmatpush.msrb.mxu2 %v272_v24  ;;  %v499_v24 = vld [vmem:[#allocation6 + $0xe8] sm:$0xff] }
  0x38   :  { %376 = vmatpush.msrb.mxu0 %v301_v27  ;;  %v530_v27 = vld [vmem:[#allocation6 + $0x1e0] sm:$0xff] }
  0x39   :  { %416 = vmatpush.msrb.mxu2 %v270_v29  ;;  %v528_v29 = vld [vmem:[#allocation6 + $0x1d0] sm:$0xff] }
  0x3a   :  { %377 = vmatpush.msrb.mxu0 %v299_v33  ;;  %v524_v33 = vld [vmem:[#allocation6 + $0x1b0] sm:$0xff] }
  0x3b   :  { %417 = vmatpush.msrb.mxu2 %v268_v35  ;;  %v487_v35 = vld [vmem:[#allocation6 + $0x88] sm:$0xff] }
  0x3c   :  { %378 = vmatpush.msrb.mxu0 %v297_v38 }
  0x3d   :  { %418 = vmatpush.msrb.mxu2 %v266_v41  ;;  %v498_v41 = vld [vmem:[#allocation6 + $0xe0] sm:$0xff] }
  0x3e   :  { %379 = vmatpush.msrb.mxu0 %v295_v44  ;;  %v494_v44 = vld [vmem:[#allocation6 + $0xc0] sm:$0xff] }
  0x40   :  { %380 = vmatpush.msrb.mxu0 %v293_v50  ;;  %v531_v50 = vld [vmem:[#allocation6 + $0x1e8] sm:$0xff] }
  0x42   :  { %381 = vmatpush.msrb.mxu0 %v291_v54  ;;  %v527_v54 = vld [vmem:[#allocation6 + $0x1c8] sm:$0xff] }
  0x6b   :  { %v904_v47 = vpop.permute.xlu2 %104 }
  0x6c   :  { %vm106_vm6 = vcmp.eq.s32.totalorder %v904_v47, %v909_v1  ;;  %v264_v47 = vld [vmem:[#allocation4 + $0x48] sm:$0xff] }
  0x6d   :  { %v107_v36 = vsel %vm106_vm6, 1, %v837_v0  ;;  %419 = vmatpush.msrb.mxu2 %v264_v47 }
  0x75   :  { %v911_v4 = vpop.permute.xlu2 %110 }
  0x76   :  { %vm112_vm7 = vcmp.eq.s32.totalorder %v911_v4, %v909_v1  ;;  %v289_v4 = vld [vmem:[#allocation4 + $0x110] sm:$0xff] }
  0x77   :  { %v113_v42 = vsel %vm112_vm7, 1, %v837_v0  ;;  %382 = vmatpush.msrb.mxu0 %v289_v4  ;;  %v481_v4 = vld [vmem:[#allocation6 + $0x58] sm:$0xff] }
  0x79   :  { %383 = vmatpush.msrb.mxu0 %v287_v8  ;;  %v479_v8 = vld [vmem:[#allocation6 + $0x48] sm:$0xff] }
  0x7e   :  { %v123_v31 = vpop.permute.xlu2 %122 }
  0x7f   :  { %vm124_vm8 = vcmp.eq.s32.totalorder %v123_v31, %v909_v1  ;;  %v526_v31 = vld [vmem:[#allocation6 + $0x1c0] sm:$0xff] }
  0x80   :  { %v125_v48 = vsel %vm124_vm8, 1, %v837_v0 }
  0x82   :  { %v82_v52 = vpop.permute.xlu0 %81 }
  0x83   :  { %v906_v53 = vpop.permute.xlu1 %92  ;;  %vm83_vm2 = vcmp.eq.s32.totalorder %v82_v52, %v909_v1  ;;  %v262_v52 = vld [vmem:[#allocation4 + $0x38] sm:$0xff] }
  0x84   :  { %vm94_vm3 = vcmp.eq.s32.totalorder %v906_v53, %v909_v1  ;;  %v84_v19 = vsel %vm83_vm2, 1, %v837_v0  ;;  %v259_v53 = vld [vmem:[#allocation4 + $0x20] sm:$0xff]  ;;  %420 = vmatpush.msrb.mxu2 %v262_v52  ;;  %v529_v52 = vld [vmem:[#allocation6 + $0x1d8] sm:$0xff] }
  0x85   :  { %v95_v25 = vsel %vm94_vm3, 1, %v837_v0  ;;  %361 = vmatpush.msra.mxu3 %v259_v53  ;;  %v488_v53 = vld [vmem:[#allocation6 + $0x90] sm:$0xff] }
  0x86   :  { %421 = vmatpush.msrb.mxu2 %v260_v56  ;;  %v486_v56 = vld [vmem:[#allocation6 + $0x80] sm:$0xff] }
  0x87   :  { %362 = vmatpush.msra.mxu3 %v257_v57  ;;  %v525_v57 = vld [vmem:[#allocation6 + $0x1b8] sm:$0xff] }
  0x88   :  { %422 = vmatpush.msrb.mxu2 %v258_v5  ;;  %v519_v5 = vld [vmem:[#allocation6 + $0x188] sm:$0xff] }
  0x89   :  { %363 = vmatpush.msra.mxu3 %v255_v60  ;;  %v523_v60 = vld [vmem:[#allocation6 + $0x1a8] sm:$0xff] }
  0x8a   :  { %423 = vmatpush.msrb.mxu2 %v256_v9  ;;  %v517_v9 = vld [vmem:[#allocation6 + $0x178] sm:$0xff] }
  0x8b   :  { %v87_v13 = vpop.permute.xlu0 %86  ;;  %719 = vmatpush.msk.msrb.mxu3 %vm341_vm1, %v330_v7  ;;  %v516_v7 = vld [vmem:[#allocation6 + $0x170] sm:$0xff] }
  0x8c   :  { %v99_v14 = vpop.permute.xlu1 %98  ;;  %vm88_vm4 = vcmp.eq.s32.totalorder %v87_v13, %v909_v1  ;;  %v326_v13 = vld [vmem:[#allocation4 + $0x238] sm:$0xff] }
  0x8d   :  { %v89_v20 = vsel %vm88_vm4, 1, %v837_v0  ;;  %vm100_vm5 = vcmp.eq.s32.totalorder %v99_v14, %v909_v1  ;;  %459 = vmatpush.msrb.mxu3 %v328_v11  ;;  %v298_v14 = vld [vmem:[#allocation4 + $0x158] sm:$0xff]  ;;  %v514_v11 = vld [vmem:[#allocation6 + $0x160] sm:$0xff] }
  0x8e   :  { %v90_v23 = vadd.s32 %v89_v20, %v84_v19  ;;  %v101_v30 = vsel %vm100_vm5, 1, %v837_v0  ;;  %v320_v19 = vld [vmem:[#allocation4 + $0x208] sm:$0xff] }
  0x8f   :  { %460 = vmatpush.msrb.mxu3 %v326_v13  ;;  %v292_v20 = vld [vmem:[#allocation4 + $0x128] sm:$0xff] }
  0x90   :  { %v96_v28 = vadd.s32 %v95_v25, %v90_v23  ;;  %v501_v23 = vld [vmem:[#allocation6 + $0xf8] sm:$0xff]  ;;  %v515_v13 = vld [vmem:[#allocation6 + $0x168] sm:$0xff] }
  0x91   :  { %461 = vmatpush.msrb.mxu3 %v324_v15  ;;  %v497_v25 = vld [vmem:[#allocation6 + $0xd8] sm:$0xff]  ;;  %v512_v15 = vld [vmem:[#allocation6 + $0x150] sm:$0xff] }
  0x92   :  { %v102_v34 = vadd.s32 %v101_v30, %v96_v28  ;;  %v495_v28 = vld [vmem:[#allocation6 + $0xc8] sm:$0xff]  ;;  %v493_v30 = vld [vmem:[#allocation6 + $0xb8] sm:$0xff] }
  0x93   :  { %462 = vmatpush.msrb.mxu3 %v322_v17  ;;  %v513_v17 = vld [vmem:[#allocation6 + $0x158] sm:$0xff] }
  0x94   :  { %v108_v39 = vadd.s32 %v107_v36, %v102_v34  ;;  %v489_v34 = vld [vmem:[#allocation6 + $0x98] sm:$0xff] }
  0x95   :  { %v117_v40 = vpop.permute.xlu1 %116  ;;  %463 = vmatpush.msrb.mxu3 %v320_v19  ;;  %v510_v19 = vld [vmem:[#allocation6 + $0x140] sm:$0xff] }
  0x96   :  { %vm118_vm9 = vcmp.eq.s32.totalorder %v117_v40, %v909_v1  ;;  %v114_v45 = vadd.s32 %v113_v42, %v108_v39  ;;  %v310_v1 = vld [vmem:[#allocation4 + $0x1b8] sm:$0xff]  ;;  %v500_v40 = vld [vmem:[#allocation6 + $0xf0] sm:$0xff] }
  0x97   :  { %v119_v46 = vsel %vm118_vm9, 1, %v837_v0  ;;  %v496_v42 = vld [vmem:[#allocation6 + $0xd0] sm:$0xff] }
  0x98   :  { %v120_v51 = vadd.s32 %v119_v46, %v114_v45 }
  0x9a   :  { %v126_v55 = vadd.s32 %v125_v48, %v120_v51  ;;  %v533_v48 = vld [vmem:[#allocation6 + $0x1f8] sm:$0xff]  ;;  %v490_v51 = vld [vmem:[#allocation6 + $0xa0] sm:$0xff] }
  0x9c   :  { %v127_v58 = vcvt.s32.f32 %v126_v55 }
  0x9e   :  { %v128_v0 = vpack.c.bf16 %v127_v58, %v127_v58  ;;  %v484_v58 = vld [vmem:[#allocation6 + $0x70] sm:$0xff] }
  0xa0   :  { %714 = vmatmul.msk.bf16.vlgmr.msra.gmra.mxu0 %vm199_vm10, %v128_v0  ;;  %715 = vmatmul.msk.bf16.vlgmr.msra.gmra.mxu1 %vm199_vm10, %v128_v0 }
  0xa1   :  { %716 = vmatmul.msk.bf16.vlgmr.msra.gmra.mxu2 %vm199_vm10, %v128_v0  ;;  %428 = vmatpush.msra.mxu1 %v318_v59  ;;  %v522_v0 = vld [vmem:[#allocation6 + $0x1a0] sm:$0xff]  ;;  %v485_v59 = vld [vmem:[#allocation6 + $0x78] sm:$0xff] }
  0xa2   :  { %580 = vmatpush.msra.mxu2 %v501_v23  ;;  %560 = vmatpush.msra.mxu0 %v532_v26  ;;  %v508_v23 = vld [vmem:[#allocation6 + $0x130] sm:$0xff]  ;;  %v506_v26 = vld [vmem:[#allocation6 + $0x120] sm:$0xff] }
  0xa3   :  { %429 = vmatpush.msra.mxu1 %v316_v61  ;;  %v482_v61 = vld [vmem:[#allocation6 + $0x60] sm:$0xff] }
  0xa4   :  { %581 = vmatpush.msra.mxu2 %v499_v24  ;;  %561 = vmatpush.msra.mxu0 %v530_v27  ;;  %v471_v24 = vld [vmem:[#allocation6 + $0x8] sm:$0xff] }
  0xa5   :  { %430 = vmatpush.msra.mxu1 %v314_v62  ;;  %v520_v62 = vld [vmem:[#allocation6 + $0x190] sm:$0xff]  ;;  %v507_v27 = vld [vmem:[#allocation6 + $0x128] sm:$0xff] }
  0xa6   :  { %582 = vmatpush.msra.mxu2 %v497_v25  ;;  %562 = vmatpush.msra.mxu0 %v528_v29  ;;  %v509_v25 = vld [vmem:[#allocation6 + $0x138] sm:$0xff] }
  0xa7   :  { %431 = vmatpush.msra.mxu1 %v312_v63  ;;  %v483_v63 = vld [vmem:[#allocation6 + $0x68] sm:$0xff]  ;;  %v505_v29 = vld [vmem:[#allocation6 + $0x118] sm:$0xff] }
  0xa8   :  { %583 = vmatpush.msra.mxu2 %v495_v28  ;;  %563 = vmatpush.msra.mxu0 %v526_v31  ;;  %v504_v28 = vld [vmem:[#allocation6 + $0x110] sm:$0xff]  ;;  %v503_v31 = vld [vmem:[#allocation6 + $0x108] sm:$0xff] }
  0xa9   :  { %432 = vmatpush.msra.mxu1 %v310_v1  ;;  %v521_v1 = vld [vmem:[#allocation6 + $0x198] sm:$0xff] }
  0xaa   :  { %584 = vmatpush.msra.mxu2 %v493_v30  ;;  %564 = vmatpush.msra.mxu0 %v524_v33  ;;  %v502_v30 = vld [vmem:[#allocation6 + $0x100] sm:$0xff] }
  0xab   :  { %433 = vmatpush.msra.mxu1 %v308_v2  ;;  %v480_v2 = vld [vmem:[#allocation6 + $0x50] sm:$0xff] }
  0xac   :  { %585 = vmatpush.msra.mxu2 %v491_v32  ;;  %565 = vmatpush.msra.mxu0 %v522_v0  ;;  %v331_v32 = vld [vmem:[%s959_s3] sm:$0x3] }
  0xad   :  { %434 = vmatpush.msra.mxu1 %v306_v3  ;;  %v518_v3 = vld [vmem:[#allocation6 + $0x180] sm:$0xff]  ;;  %v333_v33 = vperm.slane %v331_v32, 0 }
  0xae   :  { %586 = vmatpush.msra.mxu2 %v489_v34  ;;  %566 = vmatpush.msra.mxu0 %v520_v62  ;;  %v622_v62 = vld [vmem:[%s962_s6] sm:$0xff] }
  0xaf   :  { %435 = vmatpush.msra.mxu1 %v304_v6  ;;  %v478_v6 = vld [vmem:[#allocation6 + $0x40] sm:$0xff] }
  0xb0   :  { %587 = vmatpush.msra.mxu2 %v487_v35  ;;  %567 = vmatpush.msra.mxu0 %v518_v3 }
  0xb1   :  { %436 = vmatpush.msra.mxu1 %v302_v10  ;;  %v476_v10 = vld [vmem:[#allocation6 + $0x30] sm:$0xff] }
  0xb2   :  { %588 = vmatpush.msra.mxu2 %v485_v59  ;;  %568 = vmatpush.msra.mxu0 %v516_v7 }
  0xb3   :  { %437 = vmatpush.msra.mxu1 %v300_v12  ;;  %v477_v12 = vld [vmem:[#allocation6 + $0x38] sm:$0xff] }
  0xb4   :  { %589 = vmatpush.msra.mxu2 %v483_v63  ;;  %569 = vmatpush.msra.mxu0 %v514_v11  ;;  %v623_v63 = vld [vmem:[%s962_s6 + $0x8] sm:$0xff] }
  0xb5   :  { %438 = vmatpush.msra.mxu1 %v298_v14  ;;  %v474_v14 = vld [vmem:[#allocation6 + $0x20] sm:$0xff] }
  0xb6   :  { %590 = vmatpush.msra.mxu2 %v481_v4  ;;  %570 = vmatpush.msra.mxu0 %v512_v15 }
  0xb7   :  { %439 = vmatpush.msra.mxu1 %v296_v16  ;;  %v475_v16 = vld [vmem:[#allocation6 + $0x28] sm:$0xff] }
  0xb8   :  { %591 = vmatpush.msra.mxu2 %v479_v8  ;;  %571 = vmatpush.msra.mxu0 %v510_v19 }
  0xb9   :  { %440 = vmatpush.msra.mxu1 %v294_v18  ;;  %v472_v18 = vld [vmem:[#allocation6 + $0x10] sm:$0xff] }
  0xba   :  { %592 = vmatpush.msra.mxu2 %v477_v12  ;;  %572 = vmatpush.msra.mxu0 %v508_v23 }
  0xbb   :  { %441 = vmatpush.msra.mxu1 %v292_v20  ;;  %v473_v20 = vld [vmem:[#allocation6 + $0x18] sm:$0xff] }
  0xbc   :  { %593 = vmatpush.msra.mxu2 %v475_v16  ;;  %573 = vmatpush.msra.mxu0 %v506_v26 }
  0xbd   :  { %442 = vmatpush.msra.mxu1 %v290_v21  ;;  %v511_v21 = vld [vmem:[#allocation6 + $0x148] sm:$0xff] }
  0xbe   :  { %594 = vmatpush.msra.mxu2 %v473_v20  ;;  %574 = vmatpush.msra.mxu0 %v504_v28 }
  0xbf   :  { %443 = vmatpush.msra.mxu1 %v288_v22  ;;  %v470_v22 = vld [vmem:[#allocation6] sm:$0xff] }
  0xc0   :  { %595 = vmatpush.msra.mxu2 %v471_v24  ;;  %575 = vmatpush.msra.mxu0 %v502_v30 }
 0x11d   :  { %v222_v36 = vpop.f32.mrf.mxu0  ;;  %v235_v37 = vpop.f32.mrf.mxu1 }
 0x11e   :  { %v252_v38 = vmul.f32 0.125, %v222_v36  ;;  %v253_v39 = vmul.f32 0.125, %v235_v37 }
 0x120   :  { %364 = vmatmul.f32.vlgmr.msra.gmra.mxu3 %v252_v38  ;;  %384 = vmatmul.f32.vlgmr.msrb.gmra.mxu0 %v253_v39 }
 0x121   :  { %424 = vmatmul.f32.vlgmr.msrb.gmra.mxu2 %v252_v38  ;;  %540 = vmatpush.msra.mxu3 %v500_v40 }
 0x123   :  { %541 = vmatpush.msra.mxu3 %v498_v41 }
 0x124   :  { %v248_v43 = vpop.f32.mrf.mxu2 }
 0x125   :  { %v254_v45 = vmul.f32 0.125, %v248_v43  ;;  %v224_v46 = vpop.f32.mrf.mxu0  ;;  %v237_v47 = vpop.f32.mrf.mxu1  ;;  %542 = vmatpush.msra.mxu3 %v496_v42 }
 0x127   :  { %718 = vmatmul.msk.f32.vlgmr.msrb.gmra.mxu1 %vm337_vm11, %v254_v45  ;;  %543 = vmatpush.msra.mxu3 %v494_v44 }
 0x128   :  { %720 = vmatmul.msk.f32.vlgmr.msrb.gmra.mxu3 %vm337_vm11, %v254_v45  ;;  %600 = vmatpush.msrb.mxu1 %v533_v48 }
 0x129   :  { %544 = vmatpush.msra.mxu3 %v492_v49  ;;  %v624_v49 = vld [vmem:[%s963_s7] sm:$0xff] }
 0x12a   :  { %601 = vmatpush.msrb.mxu1 %v531_v50  ;;  %627 = vperm.xlu0 %753, %v624_v49   ;;  %v534_v50 = vld [vmem:[%s961_s5] sm:$0x3] }
 0x12b   :  { %545 = vmatpush.msra.mxu3 %v490_v51  ;;  %v536_v51 = vperm.slane %v534_v50, 0 }
 0x12c   :  { %v250_v55 = vpop.f32.mrf.mxu2  ;;  %602 = vmatpush.msrb.mxu1 %v529_v52  ;;  %v537_v52 = vperm.slane %v534_v50, 1 }
 0x12d   :  { %546 = vmatpush.msra.mxu3 %v488_v53 }
 0x12e   :  { %603 = vmatpush.msrb.mxu1 %v527_v54 }
 0x12f   :  { %444 = vmatmul.f32.vlgmr.msra.gmra.mxu1 %v253_v39  ;;  %547 = vmatpush.msra.mxu3 %v486_v56  ;;  %v334_v39 = vperm.slane %v331_v32, 1 }
 0x130   :  { %604 = vmatpush.msrb.mxu1 %v525_v57 }
 0x131   :  { %548 = vmatpush.msra.mxu3 %v484_v58 }
 0x132   :  { %605 = vmatpush.msrb.mxu1 %v523_v60 }
 0x133   :  { %549 = vmatpush.msra.mxu3 %v482_v61 }
 0x134   :  { %606 = vmatpush.msrb.mxu1 %v521_v1 }
 0x135   :  { %550 = vmatpush.msra.mxu3 %v480_v2 }
 0x136   :  { %607 = vmatpush.msrb.mxu1 %v519_v5 }
 0x137   :  { %551 = vmatpush.msra.mxu3 %v478_v6 }
 0x138   :  { %608 = vmatpush.msrb.mxu1 %v517_v9 }
 0x139   :  { %552 = vmatpush.msra.mxu3 %v476_v10 }
 0x13a   :  { %609 = vmatpush.msrb.mxu1 %v515_v13 }
 0x13b   :  { %553 = vmatpush.msra.mxu3 %v474_v14 }
 0x13c   :  { %610 = vmatpush.msrb.mxu1 %v513_v17 }
 0x13d   :  { %554 = vmatpush.msra.mxu3 %v472_v18 }
 0x13e   :  { %611 = vmatpush.msrb.mxu1 %v511_v21 }
 0x13f   :  { %555 = vmatpush.msra.mxu3 %v470_v22 }
 0x140   :  { %612 = vmatpush.msrb.mxu1 %v509_v25 }
 0x142   :  { %613 = vmatpush.msrb.mxu1 %v507_v27 }
 0x144   :  { %614 = vmatpush.msrb.mxu1 %v505_v29 }
 0x146   :  { %615 = vmatpush.msrb.mxu1 %v503_v31 }
 0x19c   :  { %v628_v1 = vpop.permute.xlu0 %627 }
 0x19d   :  { %v385_v37 = vpop.f32.mrf.mxu0 }
 0x1a3   :  { %v365_v34 = vpop.f32.mrf.mxu3 }
 0x1a4   :  { %v366_v35 = vadd.f32 %v365_v34, %v333_v33  ;;  %v405_v36 = vpop.f32.mrf.mxu1  ;;  %v425_v41 = vpop.f32.mrf.mxu2 }
 0x1a5   :  { %v426_v43 = vadd.f32 %v425_v41, %v334_v39 }
 0x1a6   :  { %v386_v38 = vadd.f32 %v385_v37, %v366_v35 }
 0x1a8   :  { %v406_v40 = vadd.f32 %v405_v36, %v386_v38 }
 0x1aa   :  { %v468_v42 = vmax.f32 %v406_v40, 0.0 }
 0x1ab   :  { %v465_v46 = vpop.f32.mrf.mxu3 }
 0x1ac   :  { %v445_v44 = vpop.f32.mrf.mxu1  ;;  %556 = vmatmul.f32.vlgmr.msra.gmra.mxu3 %v468_v42  ;;  %596 = vmatmul.f32.vlgmr.msra.gmra.mxu2 %v468_v42 }
 0x1ad   :  { %v446_v45 = vadd.f32 %v445_v44, %v426_v43 }
 0x1af   :  { %v466_v47 = vadd.f32 %v465_v46, %v446_v45 }
 0x1b1   :  { %v469_v48 = vmax.f32 %v466_v47, 0.0 }
 0x1b3   :  { %576 = vmatmul.f32.vlgmr.msra.gmra.mxu0 %v469_v48  ;;  %616 = vmatmul.f32.vlgmr.msrb.gmra.mxu1 %v469_v48 }
 0x22f   :  { %v557_v53 = vpop.f32.mrf.mxu3  ;;  %v597_v54 = vpop.f32.mrf.mxu2 }
 0x230   :  { %v558_v55 = vadd.f32 %v557_v53, %v536_v51  ;;  %v598_v56 = vadd.f32 %v597_v54, %v537_v52  ;;  %v577_v57 = vpop.f32.mrf.mxu0  ;;  %v617_v58 = vpop.f32.mrf.mxu1 }
 0x232   :  { %v578_v0 = vadd.f32 %v577_v57, %v558_v55  ;;  %v618_v59 = vadd.f32 %v617_v58, %v598_v56 }
 0x234   :  { %v620_v60 = vmax.f32 %v578_v0, 0.0  ;;  %v621_v61 = vmax.f32 %v618_v59, 0.0 }
 0x236   :  { %645 = vmatpush.xpose.msrb.mxu3 %v620_v60  ;;  %665 = vmatpush.xpose.msrb.mxu0 %v621_v61 }
 0x239   :  { %646 = vmatmul.f32.vlgmr.msrb.gmra.mxu3 %v622_v62  ;;  %666 = vmatmul.f32.vlgmr.msrb.gmra.mxu0 %v623_v63 }
 0x2b6   :  { %v667_v3 = vpop.f32.mrf.mxu0 }
 0x2bc   :  { %v647_v2 = vpop.f32.mrf.mxu3 }
 0x2bd   :  { %v648_v4 = vadd.f32 %v647_v2, %v628_v1 }
 0x2bf   :  { %v668_v5 = vadd.f32 %v667_v3, %v648_v4 }
 0x2c1   :  { %671 = vst.msk [vmem:[%s964_s8] sm:$0xff] %vm670_vm12, %v668_v5 }
 0x2c2   :  { %676 = vsyncpa [#allocation3], 1 }
 0x2c3   :  { %677 = vsyncpa [#allocation5], 1 }

</bundles_post_ra>
